<compile_context>
chip_gen: v7x
topology: tpu7x:2x2x1
jax: 0.10.0
libtpu: 0.0.40
codegen_flags: <defaults>
</compile_context>

<pallas_src>
import functools

import jax
import jax.numpy as jnp
from jax.experimental import pallas as pl
from jax.experimental.pallas import tpu as pltpu


# ----------------------- Fused FFN kernel -----------------------

def _ffn_kernel(x_ref, w1_ref, b1_ref, w2_ref, b2_ref, o_ref, *, eps):
    # x_ref: (tm, D) f32   w1_ref: (D, d_ff) bf16   b1_ref: (1, d_ff) f32
    # w2_ref: (d_ff, D) bf16   b2_ref: (1, D) f32   o_ref: (tm, D) f32
    x = x_ref[...]                       # f32, also the residual
    # conv1 (1x1 conv == linear) + ReLU : bf16 MXU matmul, f32 accumulate
    h = jnp.dot(x.astype(jnp.bfloat16), w1_ref[...],
                preferred_element_type=jnp.float32)
    h = jnp.maximum(h + b1_ref[...], 0.0)
    # conv2 (1x1 conv == linear)
    y = jnp.dot(h.astype(jnp.bfloat16), w2_ref[...],
                preferred_element_type=jnp.float32)
    y = y + b2_ref[...]
    # dropout: identity (inference).  Residual add + LayerNorm(embed_dim)
    # (LN is constructed fresh each forward -> weight=1, bias=0).
    y = y + x
    mean = jnp.mean(y, axis=-1, keepdims=True)
    var = jnp.mean((y - mean) ** 2, axis=-1, keepdims=True)
    o_ref[...] = (y - mean) * jax.lax.rsqrt(var + eps)


def _pick_tm(M):
    for tm in (256, 128, 64, 32, 16, 8):
        if M % tm == 0:
            return tm
    return M


def pos_wise_ffn(x, w1, b1, w2, b2, eps=1e-5):
    """Fused PosWiseFeedForwardNet forward.

    x: (B, L, D) f32
    w1: (D, d_ff), b1: (d_ff,)   -- conv1 (kernel_size=1) as a linear
    w2: (d_ff, D), b2: (D,)      -- conv2 (kernel_size=1) as a linear
    returns (B, L, D) f32
    """
    B, L, D = x.shape
    d_ff = w1.shape[1]
    M = B * L
    tm = _pick_tm(M)

    x2d = x.reshape(M, D)
    # Weights live in HBM as bf16 (half the DMA bytes, MXU-native).
    w1_bf = w1.astype(jnp.bfloat16)
    w2_bf = w2.astype(jnp.bfloat16)
    b1_2d = b1.reshape(1, d_ff).astype(jnp.float32)
    b2_2d = b2.reshape(1, D).astype(jnp.float32)

    out2d = pl.pallas_call(
        functools.partial(_ffn_kernel, eps=eps),
        out_shape=jax.ShapeDtypeStruct((M, D), jnp.float32),
        grid=(M // tm,),
        in_specs=[
            pl.BlockSpec((tm, D), lambda i: (i, 0)),      # x tile
            pl.BlockSpec((D, d_ff), lambda i: (0, 0)),    # W1 (resident)
            pl.BlockSpec((1, d_ff), lambda i: (0, 0)),    # b1
            pl.BlockSpec((d_ff, D), lambda i: (0, 0)),    # W2 (resident)
            pl.BlockSpec((1, D), lambda i: (0, 0)),       # b2
        ],
        out_specs=pl.BlockSpec((tm, D), lambda i: (i, 0)),
        compiler_params=pltpu.CompilerParams(
            dimension_semantics=("parallel",)),
    )(x2d, w1_bf, b1_2d, w2_bf, b2_2d)
    return out2d.reshape(B, L, D)


# ----------------------- Pure-JAX reference (for sanity) -----------------------

def pos_wise_ffn_ref(x, w1, b1, w2, b2, eps=1e-5):
    h = jnp.maximum(jnp.einsum("bld,df->blf", x, w1) + b1, 0.0)
    y = jnp.einsum("blf,fd->bld", h, w2) + b2
    y = y + x
    mean = jnp.mean(y, axis=-1, keepdims=True)
    var = jnp.mean((y - mean) ** 2, axis=-1, keepdims=True)
    return (y - mean) * jax.lax.rsqrt(var + eps)


# ----------------------- Main -----------------------

if __name__ == "__main__":
    # Small shapes consistent with the module (original encoder use is
    # (B, 196, 2048) with d_ff=4096); lane-dense multiples of 128.
    B, L = 2, 16
    embed_dim, d_ff = 128, 256

    key = jax.random.PRNGKey(0)
    k_x, k1, k2, k3, k4 = jax.random.split(key, 5)
    scale = 0.05
    x = jax.random.normal(k_x, (B, L, embed_dim), jnp.float32)
    w1 = scale * jax.random.normal(k1, (embed_dim, d_ff), jnp.float32)
    b1 = scale * jax.random.normal(k2, (d_ff,), jnp.float32)
    w2 = scale * jax.random.normal(k3, (d_ff, embed_dim), jnp.float32)
    b2 = scale * jax.random.normal(k4, (embed_dim,), jnp.float32)

    out = pos_wise_ffn(x, w1, b1, w2, b2)
    jax.block_until_ready(out)

    assert out.shape == (B, L, embed_dim)
    assert bool(jnp.all(jnp.isfinite(out)))

    # Loose tolerance: kernel uses bf16 MXU matmuls with f32 accumulation.
    ref = pos_wise_ffn_ref(x, w1, b1, w2, b2)
    max_err = float(jnp.max(jnp.abs(out - ref)))
    assert max_err < 1e-1, f"max abs error too large: {max_err}"

    print("KERNEL_OK")
</pallas_src>

<mosaic_0001>
module attributes {stable_mosaic.version = 11 : i64} {
  func.func @_ffn_kernel(%arg0: i32, %arg1: memref<32x128xf32, #tpu.memory_space<vmem>>, %arg2: memref<128x256xbf16, #tpu.memory_space<vmem>>, %arg3: memref<1x256xf32, #tpu.memory_space<vmem>>, %arg4: memref<256x128xbf16, #tpu.memory_space<vmem>>, %arg5: memref<1x128xf32, #tpu.memory_space<vmem>>, %arg6: memref<32x128xf32, #tpu.memory_space<vmem>>) attributes {dimension_semantics = [#tpu.dimension_semantics<parallel>], iteration_bounds = array<i64: 1>, scalar_prefetch = 0 : i64, scratch_operands = 0 : i64, tpu.core_type = #tpu.core_type<tc>, window_params = [{transform_indices = @transform_0, window_bounds = array<i64: 32, 128>}, {pipeline_mode = #tpu.pipeline_mode<synchronous>, transform_indices = @transform_1, window_bounds = array<i64: 128, 256>}, {pipeline_mode = #tpu.pipeline_mode<synchronous>, transform_indices = @transform_2, window_bounds = array<i64: 1, 256>}, {pipeline_mode = #tpu.pipeline_mode<synchronous>, transform_indices = @transform_3, window_bounds = array<i64: 256, 128>}, {pipeline_mode = #tpu.pipeline_mode<synchronous>, transform_indices = @transform_4, window_bounds = array<i64: 1, 128>}, {transform_indices = @transform_5, window_bounds = array<i64: 32, 128>}]} {
    %c0 = arith.constant 0 : index
    %c0_0 = arith.constant 0 : index
    %0 = vector.load %arg1[%c0, %c0_0] : memref<32x128xf32, #tpu.memory_space<vmem>>, vector<32x128xf32>
    %1 = arith.truncf %0 : vector<32x128xf32> to vector<32x128xbf16>
    %c0_1 = arith.constant 0 : index
    %c0_2 = arith.constant 0 : index
    %2 = vector.load %arg2[%c0_1, %c0_2] : memref<128x256xbf16, #tpu.memory_space<vmem>>, vector<128x256xbf16>
    %cst = arith.constant dense<0.000000e+00> : vector<32x256xf32>
    %3 = tpu.matmul %1, %2, %cst {dimension_numbers = #tpu.dot_dimension_numbers<[1], [0], [0], [1], [0, 0, 1, 1], [], []>} : vector<32x128xbf16>, vector<128x256xbf16>, vector<32x256xf32> -> vector<32x256xf32>
    %c0_3 = arith.constant 0 : index
    %c0_4 = arith.constant 0 : index
    %4 = vector.load %arg3[%c0_3, %c0_4] : memref<1x256xf32, #tpu.memory_space<vmem>>, vector<1x256xf32>
    %5 = vector.broadcast %4 : vector<1x256xf32> to vector<32x256xf32>
    %6 = arith.addf %3, %5 : vector<32x256xf32>
    %cst_5 = arith.constant 0.000000e+00 : f32
    %7 = vector.broadcast %cst_5 : f32 to vector<32x256xf32>
    %8 = arith.maximumf %6, %7 : vector<32x256xf32>
    %9 = arith.truncf %8 : vector<32x256xf32> to vector<32x256xbf16>
    %c0_6 = arith.constant 0 : index
    %c0_7 = arith.constant 0 : index
    %10 = vector.load %arg4[%c0_6, %c0_7] : memref<256x128xbf16, #tpu.memory_space<vmem>>, vector<256x128xbf16>
    %cst_8 = arith.constant dense<0.000000e+00> : vector<32x128xf32>
    %11 = tpu.matmul %9, %10, %cst_8 {dimension_numbers = #tpu.dot_dimension_numbers<[1], [0], [0], [1], [0, 0, 1, 1], [], []>} : vector<32x256xbf16>, vector<256x128xbf16>, vector<32x128xf32> -> vector<32x128xf32>
    %c0_9 = arith.constant 0 : index
    %c0_10 = arith.constant 0 : index
    %12 = vector.load %arg5[%c0_9, %c0_10] : memref<1x128xf32, #tpu.memory_space<vmem>>, vector<1x128xf32>
    %13 = vector.broadcast %12 : vector<1x128xf32> to vector<32x128xf32>
    %14 = arith.addf %11, %13 : vector<32x128xf32>
    %15 = arith.addf %14, %0 : vector<32x128xf32>
    %cst_11 = arith.constant dense<0.000000e+00> : vector<32xf32>
    %16 = vector.multi_reduction <add>, %15, %cst_11 [1] : vector<32x128xf32> to vector<32xf32>
    %17 = vector.shape_cast %16 : vector<32xf32> to vector<32x1xf32>
    %cst_12 = arith.constant 1.280000e+02 : f32
    %18 = vector.broadcast %cst_12 : f32 to vector<32x1xf32>
    %19 = arith.divf %17, %18 : vector<32x1xf32>
    %20 = vector.broadcast %19 : vector<32x1xf32> to vector<32x128xf32>
    %21 = arith.subf %15, %20 : vector<32x128xf32>
    %22 = arith.mulf %21, %21 : vector<32x128xf32>
    %cst_13 = arith.constant dense<0.000000e+00> : vector<32xf32>
    %23 = vector.multi_reduction <add>, %22, %cst_13 [1] : vector<32x128xf32> to vector<32xf32>
    %24 = vector.shape_cast %23 : vector<32xf32> to vector<32x1xf32>
    %cst_14 = arith.constant 1.280000e+02 : f32
    %25 = vector.broadcast %cst_14 : f32 to vector<32x1xf32>
    %26 = arith.divf %24, %25 : vector<32x1xf32>
    %27 = vector.broadcast %19 : vector<32x1xf32> to vector<32x128xf32>
    %28 = arith.subf %15, %27 : vector<32x128xf32>
    %cst_15 = arith.constant 9.99999974E-6 : f32
    %29 = vector.broadcast %cst_15 : f32 to vector<32x1xf32>
    %30 = arith.addf %26, %29 : vector<32x1xf32>
    %31 = math.rsqrt %30 : vector<32x1xf32>
    %32 = vector.broadcast %31 : vector<32x1xf32> to vector<32x128xf32>
    %33 = arith.mulf %28, %32 : vector<32x128xf32>
    %c0_16 = arith.constant 0 : index
    %c0_17 = arith.constant 0 : index
    %34 = vector.load %arg6[%c0_16, %c0_17] : memref<32x128xf32, #tpu.memory_space<vmem>>, vector<32x128xf32>
    tpu.vector_store %arg6[%c0_16, %c0_17], %33 {strides = array<i32>} : memref<32x128xf32, #tpu.memory_space<vmem>>, vector<32x128xf32>,
    return
  }
  func.func @transform_0(%arg0: i32) -> (i32, i32) {
    %c0_i32 = arith.constant 0 : i32
    %c0_i32_0 = arith.constant 0 : i32
    return %arg0, %c0_i32 : i32, i32
  }
  func.func @transform_1(%arg0: i32) -> (i32, i32) {
    %c0_i32 = arith.constant 0 : i32
    %c0_i32_0 = arith.constant 0 : i32
    %c0_i32_1 = arith.constant 0 : i32
    return %c0_i32, %c0_i32_0 : i32, i32
  }
  func.func @transform_2(%arg0: i32) -> (i32, i32) {
    %c0_i32 = arith.constant 0 : i32
    %c0_i32_0 = arith.constant 0 : i32
    %c0_i32_1 = arith.constant 0 : i32
    return %c0_i32, %c0_i32_0 : i32, i32
  }
  func.func @transform_3(%arg0: i32) -> (i32, i32) {
    %c0_i32 = arith.constant 0 : i32
    %c0_i32_0 = arith.constant 0 : i32
    %c0_i32_1 = arith.constant 0 : i32
    return %c0_i32, %c0_i32_0 : i32, i32
  }
  func.func @transform_4(%arg0: i32) -> (i32, i32) {
    %c0_i32 = arith.constant 0 : i32
    %c0_i32_0 = arith.constant 0 : i32
    %c0_i32_1 = arith.constant 0 : i32
    return %c0_i32, %c0_i32_0 : i32, i32
  }
  func.func @transform_5(%arg0: i32) -> (i32, i32) {
    %c0_i32 = arith.constant 0 : i32
    %c0_i32_0 = arith.constant 0 : i32
    return %arg0, %c0_i32 : i32, i32
  }
}

</mosaic_0001>

<bundles_post_ra>
// kernel: tpu_custom_call.1
= control target key start
LH: loop header
LB: loop body
LE: loop exit
PB: predicated region body
PF: predicated region fallthrough
CT: control target
= control target key end

     0   :  { %10 = vsyncpa [#allocation3], 0  ;;  %s834_s0 = inlined_call_operand.hbm [shape: f32[32,128], index: 0, kind: input, shape index: {}]   ;;  %s835_s1 = inlined_call_operand.hbm [shape: bf16[128,256], index: 1, kind: input, shape index: {}]   ;;  %s836_s2 = inlined_call_operand.vmem [shape: f32[1,256], index: 2, kind: input, shape index: {}]   ;;  %s837_s3 = inlined_call_operand.hbm [shape: bf16[256,128], index: 3, kind: input, shape index: {}]   ;;  %s838_s4 = inlined_call_operand.vmem [shape: f32[1,128], index: 4, kind: input, shape index: {}]   ;;  %s839_s5 = inlined_call_operand.hbm [shape: f32[32,128], index: 5, kind: output, shape index: {}]  }
   0x1   :  { %11 = vsyncpa [#allocation6], 0 }
   0x2   :  { %12 = vsyncpa [#allocation4], 0  ;;  %s709_s18 = smov [#allocation5]   ;;  %s710_s20 = smov [#allocation2]  }
   0x3   :  { %s30_s19 = sshll.u32 %s709_s18, 4  ;;  %s18_s21 = sshll.u32 %s710_s20, 4  ;;  %s31_s19 = int_to_ptr.vmem [resolvable:$true] %s30_s19  ;;  %s748_s21 = int_to_ptr.vmem [resolvable:$true] %s18_s21 }
   0x4   :  { %s615_s24 = scalar_lea.hbm %s835_s1, 2048 }
   0x5   :  { %p616_p0 = scmp.ne.s32.totalorder %s835_s1, %s615_s24  ;;  %p619_p1 = scmp.lt.u32.totalorder %s615_s24, %s835_s1 }
   0x7   :  { %p621_p2 = pnand %p619_p1, %p616_p0 }
   0x9   :  { %624 = shalt.err (!%p621_p2)
}
   0xa   :  { %s625_s29 = scalar_lea.vmem %s31_s19, 2048  ;;  %p630_p4 = scmp.lt.s32.totalorder %s31_s19, %s31_s19 }
   0xb   :  { %p626_p3 = scmp.ne.s32.totalorder %s31_s19, %s625_s29  ;;  %p631_p5 = scmp.lt.s32.totalorder %s625_s29, %s625_s29 }
   0xd   :  { %p632_p6 = por %p631_p5, %p630_p4 }
   0xf   :  { %p633_p7 = pnand %p632_p6, %p626_p3 }
  0x11   :  { %636 = shalt.err (!%p633_p7)
}
  0x12   :  { %s711_s30 = smov 128   ;;  %s712_s6 = smov 8  }
  0x13   :  { %36 = dma.hbm_to_vmem [thread:$0]  %s835_s1, 2048, %s31_s19, [#allocation6], %s711_s30, %s711_s30, %s712_s6  }
  0x14   :  { %s637_s11 = scalar_lea.hbm %s834_s0, 512 }
  0x15   :  { %p638_p8 = scmp.ne.s32.totalorder %s834_s0, %s637_s11  ;;  %p641_p9 = scmp.lt.u32.totalorder %s637_s11, %s834_s0 }
  0x17   :  { %p643_p10 = pnand %p641_p9, %p638_p8 }
  0x19   :  { %646 = shalt.err (!%p643_p10)
}
  0x1a   :  { %s647_s16 = scalar_lea.vmem %s748_s21, 512  ;;  %p652_p12 = scmp.lt.s32.totalorder %s748_s21, %s748_s21 }
  0x1b   :  { %p648_p11 = scmp.ne.s32.totalorder %s748_s21, %s647_s16  ;;  %p653_p13 = scmp.lt.s32.totalorder %s647_s16, %s647_s16 }
  0x1d   :  { %p654_p0 = por %p653_p13, %p652_p12 }
  0x1f   :  { %p655_p1 = pnand %p654_p0, %p648_p11 }
  0x21   :  { %658 = shalt.err (!%p655_p1)
}
  0x22   :  { %24 = dma.hbm_to_vmem [thread:$0]  %s834_s0, 512, %s748_s21, [#allocation3], %s711_s30, %s711_s30, %s712_s6  }
  0x23   :  { %s713_s18 = smov [#allocation7]   ;;  %s659_s23 = scalar_lea.hbm %s837_s3, 2048 }
  0x24   :  { %s44_s19 = sshll.u32 %s713_s18, 4  ;;  %p660_p2 = scmp.ne.s32.totalorder %s837_s3, %s659_s23  ;;  %s45_s19 = int_to_ptr.vmem [resolvable:$true] %s44_s19 }
  0x25   :  { %p663_p3 = scmp.lt.u32.totalorder %s659_s23, %s837_s3 }
  0x27   :  { %p665_p4 = pnand %p663_p3, %p660_p2 }
  0x29   :  { %668 = shalt.err (!%p665_p4)
}
  0x2a   :  { %s669_s28 = scalar_lea.vmem %s45_s19, 2048  ;;  %p674_p6 = scmp.lt.s32.totalorder %s45_s19, %s45_s19 }
  0x2b   :  { %p670_p5 = scmp.ne.s32.totalorder %s45_s19, %s669_s28  ;;  %p675_p7 = scmp.lt.s32.totalorder %s669_s28, %s669_s28 }
  0x2d   :  { %p676_p8 = por %p675_p7, %p674_p6 }
  0x2f   :  { %p677_p9 = pnand %p676_p8, %p670_p5 }
  0x31   :  { %680 = shalt.err (!%p677_p9)
}
  0x32   :  { %s714_s0 = smov 64   ;;  %s715_s21 = smov 4  }
  0x33   :  { %50 = dma.hbm_to_vmem [thread:$0]  %s837_s3, 2048, %s45_s19, [#allocation6], %s714_s0, %s714_s0, %s715_s21  }
  0x34   :  { %703 = dma.done.wait [#allocation3], 512  }
  0x35   :  { %704 = vsyncadd [#allocation3], 4294966784 }
  0x36   :  { %705 = dma.done.wait [#allocation6], 4096  }
  0x37   :  { %706 = vsyncadd [#allocation6], 4294963200  ;;  %v716_v0 = vmov 0   ;;  %v567_v1 = vld [vmem:[#allocation5 + $0x4] ss:$8 sps:$4 sm:$0xff]   ;;  %v595_v16 = vld [vmem:[#allocation7 + $0x50] sm:$0xff]   ;;  %v87_v39 = vlaneseq }
  0x38   :  { %209 = vmatprep.mubr.bf16.mxu0 %v716_v0  ;;  %v569_v2 = vld [vmem:[#allocation5] ss:$8 sps:$4 sm:$0xff]   ;;  %177 = vmatprep.subr.bf16.mxu0 %v567_v1  ;;  %v570_v3 = vld [vmem:[#allocation5 + $0x14] ss:$8 sps:$4 sm:$0xff]   ;;  %v572_v4 = vld [vmem:[#allocation5 + $0x10] ss:$8 sps:$4 sm:$0xff]  }
  0x39   :  { %178 = vmatpush1.bf16.msra.mxu0 %v569_v2  ;;  %v573_v5 = vld [vmem:[#allocation5 + $0x24] ss:$8 sps:$4 sm:$0xff]   ;;  %v575_v6 = vld [vmem:[#allocation5 + $0x20] ss:$8 sps:$4 sm:$0xff]   ;;  %v576_v7 = vld [vmem:[#allocation5 + $0x34] ss:$8 sps:$4 sm:$0xff]  }
  0x3a   :  { %179 = vmatprep.subr.bf16.mxu0 %v570_v3  ;;  %v578_v8 = vld [vmem:[#allocation5 + $0x30] ss:$8 sps:$4 sm:$0xff]   ;;  %v579_v9 = vld [vmem:[#allocation5 + $0x44] ss:$8 sps:$4 sm:$0xff]   ;;  %v581_v11 = vld [vmem:[#allocation5 + $0x40] ss:$8 sps:$4 sm:$0xff]  }
  0x3b   :  { %v591_v10 = vld [vmem:[#allocation7 + $0x40] sm:$0xff]   ;;  %v582_v13 = vld [vmem:[#allocation5 + $0x54] ss:$8 sps:$4 sm:$0xff]   ;;  %v593_v14 = vld [vmem:[#allocation7 + $0x48] sm:$0xff]   ;;  %v88_v40 = vshrl.u32 %v87_v39, 7 }
  0x3c   :  { %v592_v12 = vld [vmem:[#allocation7] sm:$0xff]   ;;  %530 = vmatprep.subr.bf16.mxu1 %v591_v10  ;;  %v594_v15 = vld [vmem:[#allocation7 + $0x8] sm:$0xff]   ;;  %v584_v17 = vld [vmem:[#allocation5 + $0x50] ss:$8 sps:$4 sm:$0xff]  }
  0x3d   :  { %180 = vmatpush1.bf16.msra.mxu0 %v572_v4  ;;  %531 = vmatpush3.bf16.msra.mxu1 %v592_v12  ;;  %v585_v18 = vld [vmem:[#allocation5 + $0x64] ss:$8 sps:$4 sm:$0xff]   ;;  %v596_v19 = vld [vmem:[#allocation7 + $0x10] sm:$0xff]   ;;  %v597_v20 = vld [vmem:[#allocation7 + $0x58] sm:$0xff]   ;;  %v89_v41 = vsub.s32 0, %v88_v40  ;;  %v93_v43 = vsub.s32 1, %v88_v40 }
  0x3e   :  { %181 = vmatprep.subr.bf16.mxu0 %v573_v5  ;;  %532 = vmatprep.subr.bf16.mxu1 %v593_v14  ;;  %v587_v21 = vld [vmem:[#allocation5 + $0x60] ss:$8 sps:$4 sm:$0xff]   ;;  %v588_v22 = vld [vmem:[#allocation5 + $0x74] ss:$8 sps:$4 sm:$0xff]   ;;  %v590_v25 = vld [vmem:[#allocation5 + $0x70] ss:$8 sps:$4 sm:$0xff]  }
  0x3f   :  { %v598_v23 = vld [vmem:[#allocation7 + $0x18] sm:$0xff]   ;;  %v599_v24 = vld [vmem:[#allocation7 + $0x60] sm:$0xff]   ;;  %v799_v27 = vld [vmem:[#allocation2 + $0x8] sm:$0xff] }
  0x40   :  { %v797_v26 = vld [vmem:[#allocation2] sm:$0xff]  ;;  %v601_v29 = vld [vmem:[#allocation7 + $0x68] sm:$0xff]   ;;  %v803_v31 = vld [vmem:[#allocation2 + $0x10] sm:$0xff] }
  0x41   :  { %182 = vmatpush1.bf16.msra.mxu0 %v575_v6  ;;  %533 = vmatpush3.bf16.msra.mxu1 %v594_v15  ;;  %v600_v28 = vld [vmem:[#allocation7 + $0x20] sm:$0xff]   ;;  %v67_v30 = vpack.c.bf16 %v799_v27, %v797_v26  ;;  %v805_v32 = vld [vmem:[#allocation2 + $0x18] sm:$0xff]  ;;  %v602_v34 = vld [vmem:[#allocation7 + $0x28] sm:$0xff]  }
  0x42   :  { %183 = vmatprep.subr.bf16.mxu0 %v576_v7  ;;  %534 = vmatprep.subr.bf16.mxu1 %v595_v16  ;;  %v68_v33 = vpack.c.bf16 %v805_v32, %v803_v31  ;;  %v603_v35 = vld [vmem:[#allocation7 + $0x70] sm:$0xff]   ;;  %v605_v37 = vld [vmem:[#allocation7 + $0x78] sm:$0xff]   ;;  %v85_v42 = vld [vmem:[%s836_s2] sm:$0x3] }
  0x43   :  { %v604_v36 = vld [vmem:[#allocation7 + $0x30] sm:$0xff]   ;;  %v606_v38 = vld [vmem:[#allocation7 + $0x38] sm:$0xff]   ;;  %v90_v44 = vrot.slane %v85_v42, %v89_v41  ;;  %v94_v45 = vrot.slane %v85_v42, %v93_v43 }
  0x45   :  { %184 = vmatpush1.bf16.msra.mxu0 %v578_v8  ;;  %535 = vmatpush3.bf16.msra.mxu1 %v596_v19 }
  0x46   :  { %185 = vmatprep.subr.bf16.mxu0 %v579_v9  ;;  %536 = vmatprep.subr.bf16.mxu1 %v597_v20 }
  0x49   :  { %186 = vmatpush1.bf16.msra.mxu0 %v581_v11  ;;  %537 = vmatpush3.bf16.msra.mxu1 %v598_v23  ;;  %v513_v11 = vld [vmem:[%s838_s4] ss:$0 sm:$0xff]  ;;  %s717_s4 = smov [#allocation8]  }
  0x4a   :  { %187 = vmatprep.subr.bf16.mxu0 %v582_v13  ;;  %538 = vmatprep.subr.bf16.mxu1 %v599_v24  ;;  %s484_s10 = sshll.u32 %s717_s4, 4  ;;  %s485_s10 = int_to_ptr.vmem [resolvable:$true] %s484_s10 }
  0x4b   :  { %s681_s11 = scalar_lea.vmem %s485_s10, 512  ;;  %p686_p11 = scmp.lt.s32.totalorder %s485_s10, %s485_s10 }
  0x4c   :  { %p682_p10 = scmp.ne.s32.totalorder %s485_s10, %s681_s11  ;;  %p687_p12 = scmp.lt.s32.totalorder %s681_s11, %s681_s11 }
  0x4d   :  { %188 = vmatpush1.bf16.msra.mxu0 %v584_v17  ;;  %539 = vmatpush3.bf16.msra.mxu1 %v600_v28 }
  0x4e   :  { %189 = vmatprep.subr.bf16.mxu0 %v585_v18  ;;  %540 = vmatprep.subr.bf16.mxu1 %v601_v29  ;;  %p688_p13 = por %p687_p12, %p686_p11 }
  0x50   :  { %p689_p0 = pnand %p688_p13, %p682_p10 }
  0x51   :  { %190 = vmatpush1.bf16.msra.mxu0 %v587_v21  ;;  %541 = vmatpush3.bf16.msra.mxu1 %v602_v34 }
  0x52   :  { %191 = vmatprep.subr.bf16.mxu0 %v588_v22  ;;  %542 = vmatprep.subr.bf16.mxu1 %v603_v35 }
  0x55   :  { %192 = vmatpush1.bf16.msra.mxu0 %v590_v25  ;;  %543 = vmatpush3.bf16.msra.mxu1 %v604_v36 }
  0x56   :  { %544 = vmatprep.subr.bf16.mxu1 %v605_v37 }
  0x58   :  { %210 = vmatmul.mubr.bf16.vlgmr.msra.gmra.mrb[0].mxu0 %v67_v30 }
  0x59   :  { %219 = vmatprep.mubr.bf16.mxu0 %v716_v0  ;;  %545 = vmatpush3.bf16.msra.mxu1 %v606_v38 }
  0x60   :  { %220 = vmatmul.mubr.bf16.gmra.mrb[4].mxu0 %v68_v33 }
 0x12b   :  { %v211_v46 = vpop.f32.mrb[0].mxu0 }
 0x12c   :  { %v212_v47 = vadd.f32 %v211_v46, %v90_v44  ;;  %v213_v48 = vpop.f32.mrb[1].mxu0 }
 0x12d   :  { %v214_v49 = vadd.f32 %v213_v48, %v94_v45  ;;  %v215_v50 = vpop.f32.mrb[2].mxu0 }
 0x12e   :  { %v216_v51 = vadd.f32 %v215_v50, %v90_v44  ;;  %v217_v52 = vpop.f32.mrb[3].mxu0  ;;  %v230_v54 = vmax.f32 %v212_v47, 0.0 }
 0x12f   :  { %v218_v53 = vadd.f32 %v217_v52, %v94_v45  ;;  %v231_v56 = vmax.f32 %v214_v49, 0.0 }
 0x130   :  { %v232_v55 = vmax.f32 %v216_v51, 0.0 }
 0x131   :  { %v233_v57 = vmax.f32 %v218_v53, 0.0 }
 0x132   :  { %v238_v58 = vpack.c.bf16 %v232_v55, %v230_v54 }
 0x133   :  { %v221_v59 = vpop.f32.mrb[4].mxu0  ;;  %v239_v60 = vpack.c.bf16 %v233_v57, %v231_v56 }
 0x134   :  { %v222_v61 = vadd.f32 %v221_v59, %v90_v44  ;;  %v223_v62 = vpop.f32.mrb[5].mxu0 }
 0x135   :  { %v224_v63 = vadd.f32 %v223_v62, %v94_v45  ;;  %v225_v0 = vpop.f32.mrb[6].mxu0  ;;  %409 = vmatprep.mubr.bf16.mxu1 %v239_v60 }
 0x136   :  { %v226_v1 = vadd.f32 %v225_v0, %v90_v44  ;;  %v227_v2 = vpop.f32.mrb[7].mxu0  ;;  %410 = vmatmul.mubr.bf16.vlgmr.msra.gmra.mrb[0].mxu1 %v238_v58  ;;  %v234_v4 = vmax.f32 %v222_v61, 0.0 }
 0x137   :  { %v228_v3 = vadd.f32 %v227_v2, %v94_v45  ;;  %v235_v6 = vmax.f32 %v224_v63, 0.0 }
 0x138   :  { %v236_v5 = vmax.f32 %v226_v1, 0.0 }
 0x139   :  { %v237_v7 = vmax.f32 %v228_v3, 0.0 }
 0x13a   :  { %v240_v8 = vpack.c.bf16 %v236_v5, %v234_v4 }
 0x13b   :  { %v241_v9 = vpack.c.bf16 %v237_v7, %v235_v6 }
 0x13d   :  { %417 = vmatprep.mubr.bf16.mxu1 %v241_v9 }
 0x13e   :  { %418 = vmatmul.mubr.bf16.gmra.mrb[4].mxu1 %v240_v8 }
 0x209   :  { %v546_v10 = vpop.f32.mrb[0].mxu1 }
 0x20a   :  { %v547_v12 = vpop.f32.mrb[1].mxu1 }
 0x20b   :  { %v548_v13 = vadd.f32 %v547_v12, %v546_v10  ;;  %v549_v14 = vpop.f32.mrb[2].mxu1 }
 0x20c   :  { %v550_v15 = vpop.f32.mrb[3].mxu1 }
 0x20d   :  { %v412_v16 = vadd.f32 %v548_v13, %v513_v11  ;;  %v551_v17 = vadd.f32 %v550_v15, %v549_v14 }
 0x20f   :  { %v415_v18 = vadd.f32 %v551_v17, %v513_v11  ;;  %v426_v19 = vadd.f32 %v412_v16, %v797_v26 }
 0x211   :  { %v552_v20 = vpop.f32.mrb[4].mxu1  ;;  %430 = vadd.xlane.f32.xlu0 %v426_v19  ;;  %v427_v24 = vadd.f32 %v415_v18, %v799_v27 }
 0x212   :  { %v553_v21 = vpop.f32.mrb[5].mxu1 }
 0x213   :  { %v554_v22 = vadd.f32 %v553_v21, %v552_v20  ;;  %v555_v23 = vpop.f32.mrb[6].mxu1 }
 0x214   :  { %v556_v25 = vpop.f32.mrb[7].mxu1 }
 0x215   :  { %v420_v28 = vadd.f32 %v554_v22, %v513_v11  ;;  %v557_v29 = vadd.f32 %v556_v25, %v555_v23  ;;  %432 = vadd.xlane.f32.xlu0 %v427_v24 }
 0x217   :  { %v423_v30 = vadd.f32 %v557_v29, %v513_v11  ;;  %v428_v33 = vadd.f32 %v420_v28, %v803_v31 }
 0x219   :  { %434 = vadd.xlane.f32.xlu1 %v428_v33  ;;  %v429_v34 = vadd.f32 %v423_v30, %v805_v32 }
 0x21d   :  { %436 = vadd.xlane.f32.xlu1 %v429_v34 }
 0x29e   :  { %v431_v35 = vpop.xlane.xlu0 %430 }
 0x29f   :  { %v439_v26 = vmul.f32 0.0078125, %v431_v35 }
 0x2a1   :  { %v443_v36 = vsub.f32 %v426_v19, %v439_v26 }
 0x2a2   :  { %v433_v37 = vpop.xlane.xlu0 %432 }
 0x2a3   :  { %v440_v38 = vmul.f32 0.0078125, %v433_v37  ;;  %v447_v39 = vmul.f32 %v443_v36, %v443_v36 }
 0x2a5   :  { %v444_v40 = vsub.f32 %v427_v24, %v440_v38  ;;  %451 = vadd.xlane.f32.xlu0 %v447_v39 }
 0x2a6   :  { %v435_v27 = vpop.xlane.xlu1 %434 }
 0x2a7   :  { %v441_v41 = vmul.f32 0.0078125, %v435_v27  ;;  %v448_v42 = vmul.f32 %v444_v40, %v444_v40 }
 0x2a9   :  { %v445_v43 = vsub.f32 %v428_v33, %v441_v41  ;;  %453 = vadd.xlane.f32.xlu1 %v448_v42 }
 0x2aa   :  { %v437_v44 = vpop.xlane.xlu1 %436 }
 0x2ab   :  { %v442_v45 = vmul.f32 0.0078125, %v437_v44  ;;  %v449_v31 = vmul.f32 %v445_v43, %v445_v43 }
 0x2ad   :  { %v446_v46 = vsub.f32 %v429_v34, %v442_v45  ;;  %455 = vadd.xlane.f32.xlu0 %v449_v31 }
 0x2af   :  { %v450_v32 = vmul.f32 %v446_v46, %v446_v46 }
 0x2b1   :  { %457 = vadd.xlane.f32.xlu1 %v450_v32 }
 0x332   :  { %v452_v47 = vpop.xlane.xlu0 %451 }
 0x333   :  { %v459_v48 = vmul.f32 0.0078125, %v452_v47 }
 0x335   :  { %v463_v49 = vadd.f32 1e-05, %v459_v48 }
 0x336   :  { %v454_v50 = vpop.xlane.xlu1 %453 }
 0x337   :  { %607 = vrsqrt.f32 %v463_v49  ;;  %v460_v51 = vmul.f32 0.0078125, %v454_v50 }
 0x339   :  { %v464_v52 = vadd.f32 1e-05, %v460_v51 }
 0x33a   :  { %v456_v53 = vpop.xlane.xlu0 %455 }
 0x33b   :  { %609 = vrsqrt.f32 %v464_v52  ;;  %v461_v54 = vmul.f32 0.0078125, %v456_v53 }
 0x33d   :  { %v465_v55 = vadd.f32 1e-05, %v461_v54 }
 0x33e   :  { %v458_v56 = vpop.xlane.xlu1 %457 }
 0x33f   :  { %611 = vrsqrt.f32 %v465_v55  ;;  %v462_v57 = vmul.f32 0.0078125, %v458_v56 }
 0x341   :  { %v608_v58 = vpop.eup %607  ;;  %v466_v59 = vadd.f32 1e-05, %v462_v57 }
 0x342   :  { %v471_v60 = vmul.f32 %v608_v58, %v443_v36 }
 0x343   :  { %613 = vrsqrt.f32 %v466_v59 }
 0x344   :  { %475 = vst [vmem:[#allocation8] sm:$0xff] %v471_v60 }
 0x345   :  { %v610_v61 = vpop.eup %609 }
 0x346   :  { %v472_v62 = vmul.f32 %v610_v61, %v444_v40 }
 0x348   :  { %476 = vst [vmem:[#allocation8 + $0x8] sm:$0xff] %v472_v62 }
 0x349   :  { %v612_v63 = vpop.eup %611 }
 0x34a   :  { %v473_v0 = vmul.f32 %v612_v63, %v445_v43 }
 0x34c   :  { %477 = vst [vmem:[#allocation8 + $0x10] sm:$0xff] %v473_v0 }
 0x34d   :  { %v614_v1 = vpop.eup %613 }
 0x34e   :  { %v474_v2 = vmul.f32 %v614_v1, %v446_v46 }
 0x350   :  { %478 = vst [vmem:[#allocation8 + $0x18] sm:$0xff] %v474_v2 }
 0x351   :  { %692 = shalt.err (!%p689_p0)
}
 0x352   :  { %s693_s14 = scalar_lea.hbm %s839_s5, 512 }
 0x353   :  { %p694_p1 = scmp.ne.s32.totalorder %s839_s5, %s693_s14  ;;  %p697_p2 = scmp.lt.u32.totalorder %s693_s14, %s839_s5 }
 0x355   :  { %p699_p3 = pnand %p697_p2, %p694_p1 }
 0x357   :  { %702 = shalt.err (!%p699_p3)
}
 0x358   :  { %490 = dma.vmem_to_hbm [thread:$0]  %s485_s10, 512, %s839_s5, [#allocation4], %s711_s30, %s711_s30, %s712_s6  }
 0x359   :  { %707 = dma.done.wait [#allocation4], 512  }
 0x35a   :  { %708 = vsyncadd [#allocation4], 4294966784 }
 0x35b   :  { %494 = vsyncpa [#allocation3], 1 }
 0x35c   :  { %495 = vsyncpa [#allocation6], 1 }
 0x35d   :  { %496 = vsyncpa [#allocation4], 1 }

</bundles_post_ra>
